<compile_context>
chip_gen: v7x
topology: tpu7x:2x2x1
jax: 0.10.0
libtpu: 0.0.40
codegen_flags: <defaults>
</compile_context>

<pallas_src>
import jax
import jax.numpy as jnp
import numpy as np
from jax import lax
from jax.experimental import pallas as pl
from jax.experimental.pallas import tpu as pltpu

# ---------------- model hyperparameters (match the nn.Module) ----------------
VOCAB_SIZE = 30        # len(vocab)
VOCAB_PAD  = 32        # vocab dim padded for the one-hot matmul
VECTOR_DIM = 32        # vector_dim
SENT_LEN   = 8         # sentence_length
HIDDEN     = 128       # nn.RNN hidden size
NUM_CLASS  = 7         # nn.Linear(128, 7)
C_PAD      = 128       # class dim padded to a full lane width
BATCH      = 8


# ----------------------------- Pallas kernel ---------------------------------
def rnn_classifier_kernel(tok_ref,    # (T*B, 1)        int32 token ids, time-major
                          eproj_ref,  # (VOCAB_PAD, H)  bf16: emb @ W_ih + (b_ih+b_hh)
                          whh_ref,    # (H, H)          bf16
                          wout_ref,   # (H, C_PAD)      bf16 (zero-padded cols)
                          bout_ref,   # (1, C_PAD)      f32 (-1e30 in padded lanes)
                          o_ref):     # (B, C_PAD)      f32 softmax probs (lane-dense)
    TB = tok_ref.shape[0]
    B = o_ref.shape[0]
    T = TB // B

    # --- hoisted embedding+input projection for ALL time steps (one matmul) ---
    tok = tok_ref[...]                                            # (T*B, 1) int32
    vocab_iota = lax.broadcasted_iota(jnp.int32, (TB, VOCAB_PAD), 1)
    onehot_all = (vocab_iota == tok).astype(jnp.bfloat16)         # (T*B, VOCAB_PAD)
    x_all = jnp.dot(onehot_all, eproj_ref[...],
                    preferred_element_type=jnp.float32)           # (T*B, H) f32

    whh = whh_ref[...]                                            # (H, H) bf16

    # --- fully-unrolled serial recurrence; h lives in vregs ------------------
    # h_0 = 0  =>  h_1 = tanh(x_0 W_ih + b)
    h = jnp.tanh(x_all[0:B, :])
    for t in range(1, T):
        z = x_all[t * B:(t + 1) * B, :] + jnp.dot(
            h.astype(jnp.bfloat16), whh, preferred_element_type=jnp.float32)
        h = jnp.tanh(z)                                           # (B, H) f32

    # --- Linear(128 -> 7) on the padded lane dim + softmax (f32) -------------
    logits = (jnp.dot(h.astype(jnp.bfloat16), wout_ref[...],
                      preferred_element_type=jnp.float32)
              + bout_ref[...])                                    # (B, C_PAD)

    m = jnp.max(logits, axis=-1, keepdims=True)
    e = jnp.exp(logits - m)
    o_ref[...] = e / jnp.sum(e, axis=-1, keepdims=True)           # exact normalization


# ------------------------- one-time weight folding ---------------------------
def fold_params(emb_table, w_ih, w_hh, b, w_out, b_out):
    """Fold embedding + input projection + bias; pad to MXU/lane-friendly shapes."""
    e_proj = emb_table @ w_ih + b                                           # (VOCAB, H) f32
    e_proj_pad = (jnp.zeros((VOCAB_PAD, HIDDEN), jnp.float32)
                  .at[:VOCAB_SIZE].set(e_proj)).astype(jnp.bfloat16)        # (32, 128) bf16
    w_hh_bf = w_hh.astype(jnp.bfloat16)                                     # (128, 128) bf16
    w_out_pad = (jnp.zeros((HIDDEN, C_PAD), jnp.float32)
                 .at[:, :NUM_CLASS].set(w_out)).astype(jnp.bfloat16)        # (128, 128) bf16
    b_out_pad = jnp.full((1, C_PAD), -1e30, jnp.float32).at[0, :NUM_CLASS].set(b_out)
    return e_proj_pad, w_hh_bf, w_out_pad, b_out_pad


# ------------------------------ jitted forward --------------------------------
@jax.jit
def torch_model_forward(tokens, e_proj_pad, w_hh_bf, w_out_pad, b_out_pad):
    """tokens: (B, T) int32 -> (B, NUM_CLASS) softmax probabilities."""
    B, T = tokens.shape
    # time-major (T*B, 1) so the kernel builds the one-hot exactly once and the
    # unrolled chain slices aligned 8-sublane blocks per step.
    tok_tm = tokens.astype(jnp.int32).T.reshape(T * B, 1)

    probs_pad = pl.pallas_call(
        rnn_classifier_kernel,
        out_shape=jax.ShapeDtypeStruct((B, C_PAD), jnp.float32),
        in_specs=[pl.BlockSpec(memory_space=pltpu.MemorySpace.VMEM)] * 5,
        out_specs=pl.BlockSpec(memory_space=pltpu.MemorySpace.VMEM),
    )(tok_tm, e_proj_pad, w_hh_bf, w_out_pad, b_out_pad)

    return probs_pad[:, :NUM_CLASS]


# ------------------------- pure-JAX reference (for check) --------------------
def reference_forward(tokens, emb_table, w_ih, w_hh, b, w_out, b_out):
    x = jnp.take(emb_table, tokens, axis=0)              # (B, T, D)
    B, T, _ = x.shape
    h = jnp.zeros((B, HIDDEN), jnp.float32)
    for t in range(T):
        h = jnp.tanh(x[:, t, :] @ w_ih + h @ w_hh + b)
    logits = h @ w_out + b_out                           # (B, 7)
    return jax.nn.softmax(logits, axis=1)


# ---------------------------------- main --------------------------------------
if __name__ == "__main__":
    key = jax.random.PRNGKey(0)
    k_emb, k_wih, k_whh, k_bih, k_bhh, k_wout, k_bout, k_x = jax.random.split(key, 8)

    # Deterministic parameter init (shapes follow the nn.Module).
    emb_table = jax.random.normal(k_emb, (VOCAB_SIZE, VECTOR_DIM), jnp.float32)
    emb_table = emb_table.at[0].set(0.0)                 # padding_idx=0

    bound = 1.0 / np.sqrt(HIDDEN)
    w_ih = jax.random.uniform(k_wih, (VECTOR_DIM, HIDDEN), jnp.float32, -bound, bound)
    w_hh = jax.random.uniform(k_whh, (HIDDEN, HIDDEN), jnp.float32, -bound, bound)
    b_ih = jax.random.uniform(k_bih, (HIDDEN,), jnp.float32, -bound, bound)
    b_hh = jax.random.uniform(k_bhh, (HIDDEN,), jnp.float32, -bound, bound)
    b = (b_ih + b_hh).reshape(1, HIDDEN)                 # combined RNN bias

    w_out = jax.random.uniform(k_wout, (HIDDEN, NUM_CLASS), jnp.float32, -bound, bound)
    b_out = jax.random.uniform(k_bout, (NUM_CLASS,), jnp.float32, -bound, bound)

    # Example token input (B, T) with ids in [0, vocab).
    tokens = jax.random.randint(k_x, (BATCH, SENT_LEN), 0, VOCAB_SIZE, jnp.int32)

    # Fold/pad weights ONCE (cached across calls), then run the jitted forward.
    folded = fold_params(emb_table, w_ih, w_hh, b, w_out, b_out)
    folded = jax.block_until_ready(folded)

    probs = torch_model_forward(tokens, *folded)
    probs = jax.block_until_ready(probs)

    ref = jax.block_until_ready(
        reference_forward(tokens, emb_table, w_ih, w_hh, b, w_out, b_out))

    # Tolerance accounts for bf16 MXU operands in the 8-step recurrence
    # (accumulation and softmax remain f32; normalization is exact).
    np.testing.assert_allclose(np.asarray(probs), np.asarray(ref), rtol=5e-2, atol=5e-3)
    assert probs.shape == (BATCH, NUM_CLASS)
    row_sums = np.asarray(probs).sum(axis=1)
    np.testing.assert_allclose(row_sums, np.ones(BATCH), rtol=1e-5, atol=1e-5)
    print("KERNEL_OK")
</pallas_src>

<mosaic_0001>
module attributes {stable_mosaic.version = 11 : i64} {
  func.func @rnn_classifier_kernel(%arg0: memref<64x1xi32, #tpu.memory_space<vmem>>, %arg1: memref<32x128xbf16, #tpu.memory_space<vmem>>, %arg2: memref<128x128xbf16, #tpu.memory_space<vmem>>, %arg3: memref<128x128xbf16, #tpu.memory_space<vmem>>, %arg4: memref<1x128xf32, #tpu.memory_space<vmem>>, %arg5: memref<8x128xf32, #tpu.memory_space<vmem>>) attributes {dimension_semantics = [], scalar_prefetch = 0 : i64, scratch_operands = 0 : i64, tpu.core_type = #tpu.core_type<tc>} {
    %c0 = arith.constant 0 : index
    %c0_0 = arith.constant 0 : index
    %0 = vector.load %arg0[%c0, %c0_0] : memref<64x1xi32, #tpu.memory_space<vmem>>, vector<64x1xi32>
    %1 = tpu.iota {dimensions = array<i32: 1>} : vector<64x32xi32>
    %2 = vector.broadcast %0 : vector<64x1xi32> to vector<64x32xi32>
    %3 = arith.cmpi eq, %1, %2 : vector<64x32xi32>
    %4 = arith.extui %3 : vector<64x32xi1> to vector<64x32xi32>
    %5 = arith.sitofp %4 : vector<64x32xi32> to vector<64x32xf32>
    %6 = arith.truncf %5 : vector<64x32xf32> to vector<64x32xbf16>
    %c0_1 = arith.constant 0 : index
    %c0_2 = arith.constant 0 : index
    %7 = vector.load %arg1[%c0_1, %c0_2] : memref<32x128xbf16, #tpu.memory_space<vmem>>, vector<32x128xbf16>
    %cst = arith.constant dense<0.000000e+00> : vector<64x128xf32>
    %8 = tpu.matmul %6, %7, %cst {dimension_numbers = #tpu.dot_dimension_numbers<[1], [0], [0], [1], [0, 0, 1, 1], [], []>} : vector<64x32xbf16>, vector<32x128xbf16>, vector<64x128xf32> -> vector<64x128xf32>
    %c0_3 = arith.constant 0 : index
    %c0_4 = arith.constant 0 : index
    %9 = vector.load %arg2[%c0_3, %c0_4] : memref<128x128xbf16, #tpu.memory_space<vmem>>, vector<128x128xbf16>
    %10 = vector.extract_strided_slice %8 {offsets = [0, 0], sizes = [8, 128], strides = [1, 1]} : vector<64x128xf32> to vector<8x128xf32>
    %11 = math.tanh %10 : vector<8x128xf32>
    %12 = vector.extract_strided_slice %8 {offsets = [8, 0], sizes = [8, 128], strides = [1, 1]} : vector<64x128xf32> to vector<8x128xf32>
    %13 = arith.truncf %11 : vector<8x128xf32> to vector<8x128xbf16>
    %cst_5 = arith.constant dense<0.000000e+00> : vector<8x128xf32>
    %14 = tpu.matmul %13, %9, %cst_5 {dimension_numbers = #tpu.dot_dimension_numbers<[1], [0], [0], [1], [0, 0, 1, 1], [], []>} : vector<8x128xbf16>, vector<128x128xbf16>, vector<8x128xf32> -> vector<8x128xf32>
    %15 = arith.addf %12, %14 : vector<8x128xf32>
    %16 = math.tanh %15 : vector<8x128xf32>
    %17 = vector.extract_strided_slice %8 {offsets = [16, 0], sizes = [8, 128], strides = [1, 1]} : vector<64x128xf32> to vector<8x128xf32>
    %18 = arith.truncf %16 : vector<8x128xf32> to vector<8x128xbf16>
    %cst_6 = arith.constant dense<0.000000e+00> : vector<8x128xf32>
    %19 = tpu.matmul %18, %9, %cst_6 {dimension_numbers = #tpu.dot_dimension_numbers<[1], [0], [0], [1], [0, 0, 1, 1], [], []>} : vector<8x128xbf16>, vector<128x128xbf16>, vector<8x128xf32> -> vector<8x128xf32>
    %20 = arith.addf %17, %19 : vector<8x128xf32>
    %21 = math.tanh %20 : vector<8x128xf32>
    %22 = vector.extract_strided_slice %8 {offsets = [24, 0], sizes = [8, 128], strides = [1, 1]} : vector<64x128xf32> to vector<8x128xf32>
    %23 = arith.truncf %21 : vector<8x128xf32> to vector<8x128xbf16>
    %cst_7 = arith.constant dense<0.000000e+00> : vector<8x128xf32>
    %24 = tpu.matmul %23, %9, %cst_7 {dimension_numbers = #tpu.dot_dimension_numbers<[1], [0], [0], [1], [0, 0, 1, 1], [], []>} : vector<8x128xbf16>, vector<128x128xbf16>, vector<8x128xf32> -> vector<8x128xf32>
    %25 = arith.addf %22, %24 : vector<8x128xf32>
    %26 = math.tanh %25 : vector<8x128xf32>
    %27 = vector.extract_strided_slice %8 {offsets = [32, 0], sizes = [8, 128], strides = [1, 1]} : vector<64x128xf32> to vector<8x128xf32>
    %28 = arith.truncf %26 : vector<8x128xf32> to vector<8x128xbf16>
    %cst_8 = arith.constant dense<0.000000e+00> : vector<8x128xf32>
    %29 = tpu.matmul %28, %9, %cst_8 {dimension_numbers = #tpu.dot_dimension_numbers<[1], [0], [0], [1], [0, 0, 1, 1], [], []>} : vector<8x128xbf16>, vector<128x128xbf16>, vector<8x128xf32> -> vector<8x128xf32>
    %30 = arith.addf %27, %29 : vector<8x128xf32>
    %31 = math.tanh %30 : vector<8x128xf32>
    %32 = vector.extract_strided_slice %8 {offsets = [40, 0], sizes = [8, 128], strides = [1, 1]} : vector<64x128xf32> to vector<8x128xf32>
    %33 = arith.truncf %31 : vector<8x128xf32> to vector<8x128xbf16>
    %cst_9 = arith.constant dense<0.000000e+00> : vector<8x128xf32>
    %34 = tpu.matmul %33, %9, %cst_9 {dimension_numbers = #tpu.dot_dimension_numbers<[1], [0], [0], [1], [0, 0, 1, 1], [], []>} : vector<8x128xbf16>, vector<128x128xbf16>, vector<8x128xf32> -> vector<8x128xf32>
    %35 = arith.addf %32, %34 : vector<8x128xf32>
    %36 = math.tanh %35 : vector<8x128xf32>
    %37 = vector.extract_strided_slice %8 {offsets = [48, 0], sizes = [8, 128], strides = [1, 1]} : vector<64x128xf32> to vector<8x128xf32>
    %38 = arith.truncf %36 : vector<8x128xf32> to vector<8x128xbf16>
    %cst_10 = arith.constant dense<0.000000e+00> : vector<8x128xf32>
    %39 = tpu.matmul %38, %9, %cst_10 {dimension_numbers = #tpu.dot_dimension_numbers<[1], [0], [0], [1], [0, 0, 1, 1], [], []>} : vector<8x128xbf16>, vector<128x128xbf16>, vector<8x128xf32> -> vector<8x128xf32>
    %40 = arith.addf %37, %39 : vector<8x128xf32>
    %41 = math.tanh %40 : vector<8x128xf32>
    %42 = vector.extract_strided_slice %8 {offsets = [56, 0], sizes = [8, 128], strides = [1, 1]} : vector<64x128xf32> to vector<8x128xf32>
    %43 = arith.truncf %41 : vector<8x128xf32> to vector<8x128xbf16>
    %cst_11 = arith.constant dense<0.000000e+00> : vector<8x128xf32>
    %44 = tpu.matmul %43, %9, %cst_11 {dimension_numbers = #tpu.dot_dimension_numbers<[1], [0], [0], [1], [0, 0, 1, 1], [], []>} : vector<8x128xbf16>, vector<128x128xbf16>, vector<8x128xf32> -> vector<8x128xf32>
    %45 = arith.addf %42, %44 : vector<8x128xf32>
    %46 = math.tanh %45 : vector<8x128xf32>
    %47 = arith.truncf %46 : vector<8x128xf32> to vector<8x128xbf16>
    %c0_12 = arith.constant 0 : index
    %c0_13 = arith.constant 0 : index
    %48 = vector.load %arg3[%c0_12, %c0_13] : memref<128x128xbf16, #tpu.memory_space<vmem>>, vector<128x128xbf16>
    %cst_14 = arith.constant dense<0.000000e+00> : vector<8x128xf32>
    %49 = tpu.matmul %47, %48, %cst_14 {dimension_numbers = #tpu.dot_dimension_numbers<[1], [0], [0], [1], [0, 0, 1, 1], [], []>} : vector<8x128xbf16>, vector<128x128xbf16>, vector<8x128xf32> -> vector<8x128xf32>
    %c0_15 = arith.constant 0 : index
    %c0_16 = arith.constant 0 : index
    %50 = vector.load %arg4[%c0_15, %c0_16] : memref<1x128xf32, #tpu.memory_space<vmem>>, vector<1x128xf32>
    %51 = vector.broadcast %50 : vector<1x128xf32> to vector<8x128xf32>
    %52 = arith.addf %49, %51 : vector<8x128xf32>
    %cst_17 = arith.constant dense<0xFF800000> : vector<8xf32>
    %53 = vector.multi_reduction <maximumf>, %52, %cst_17 [1] : vector<8x128xf32> to vector<8xf32>
    %54 = vector.shape_cast %53 : vector<8xf32> to vector<8x1xf32>
    %55 = vector.broadcast %54 : vector<8x1xf32> to vector<8x128xf32>
    %56 = arith.subf %52, %55 : vector<8x128xf32>
    %57 = math.exp %56 : vector<8x128xf32>
    %cst_18 = arith.constant dense<0.000000e+00> : vector<8xf32>
    %58 = vector.multi_reduction <add>, %57, %cst_18 [1] : vector<8x128xf32> to vector<8xf32>
    %59 = vector.shape_cast %58 : vector<8xf32> to vector<8x1xf32>
    %60 = vector.broadcast %59 : vector<8x1xf32> to vector<8x128xf32>
    %61 = arith.divf %57, %60 : vector<8x128xf32>
    %c0_19 = arith.constant 0 : index
    %c0_20 = arith.constant 0 : index
    %62 = vector.load %arg5[%c0_19, %c0_20] : memref<8x128xf32, #tpu.memory_space<vmem>>, vector<8x128xf32>
    tpu.vector_store %arg5[%c0_19, %c0_20], %61 {strides = array<i32>} : memref<8x128xf32, #tpu.memory_space<vmem>>, vector<8x128xf32>,
    return
  }
}

</mosaic_0001>

<bundles_post_ra>
// kernel: torch_model_forward.1
= control target key start
LH: loop header
LB: loop body
LE: loop exit
PB: predicated region body
PF: predicated region fallthrough
CT: control target
= control target key end

     0   :  { %10 = vsyncpa [#allocation3], 0  ;;  %s1368_s0 = inlined_call_operand.vmem [shape: s32[64,1], index: 0, kind: input, shape index: {}]   ;;  %s1369_s1 = inlined_call_operand.vmem [shape: bf16[32,128], index: 1, kind: input, shape index: {}]   ;;  %s1370_s2 = inlined_call_operand.vmem [shape: bf16[128,128], index: 2, kind: input, shape index: {}]   ;;  %s1371_s3 = inlined_call_operand.hbm [shape: bf16[128,128], index: 3, kind: input, shape index: {}]   ;;  %s1372_s4 = inlined_call_operand.vmem [shape: f32[1,128], index: 4, kind: input, shape index: {}]   ;;  %s1373_s5 = inlined_call_operand.hbm [shape: f32[8,128], index: 5, kind: output, shape index: {}]  }
   0x1   :  { %11 = vsyncpa [#allocation4], 0  ;;  %s1071_s18 = smov [#allocation2]   ;;  %s1023_s22 = scalar_lea.hbm %s1371_s3, 1024 }
   0x2   :  { %s23_s19 = sshll.u32 %s1071_s18, 4  ;;  %p1024_p0 = scmp.ne.s32.totalorder %s1371_s3, %s1023_s22  ;;  %s24_s19 = int_to_ptr.vmem [resolvable:$true] %s23_s19 }
   0x3   :  { %p1027_p1 = scmp.lt.u32.totalorder %s1023_s22, %s1371_s3 }
   0x5   :  { %p1029_p2 = pnand %p1027_p1, %p1024_p0 }
   0x7   :  { %1032 = shalt.err (!%p1029_p2)
}
   0x8   :  { %s1033_s27 = scalar_lea.vmem %s24_s19, 1024  ;;  %p1038_p4 = scmp.lt.s32.totalorder %s24_s19, %s24_s19 }
   0x9   :  { %p1034_p3 = scmp.ne.s32.totalorder %s24_s19, %s1033_s27  ;;  %p1039_p5 = scmp.lt.s32.totalorder %s1033_s27, %s1033_s27 }
   0xb   :  { %p1040_p6 = por %p1039_p5, %p1038_p4 }
   0xd   :  { %p1041_p7 = pnand %p1040_p6, %p1034_p3 }
   0xf   :  { %1044 = shalt.err (!%p1041_p7)
}
  0x10   :  { %s1072_s28 = smov 64   ;;  %s1073_s29 = smov 4  }
  0x11   :  { %29 = dma.hbm_to_vmem [thread:$0]  %s1371_s3, 1024, %s24_s19, [#allocation3], %s1072_s28, %s1072_s28, %s1073_s29  }
  0x12   :  { %1067 = dma.done.wait [#allocation3], 1024  }
  0x13   :  { %1068 = vsyncadd [#allocation3], 4294966272  ;;  %v1074_v0 = vmov 0   ;;  %v1075_v1 = vmov 0.0   ;;  %v38_v2 = vld [vmem:[%s1368_s0 + $0x10] sm:$0xff]  ;;  %v36_v3 = vld [vmem:[%s1368_s0] sm:$0xff]  ;;  %v44_v16 = vlaneseq }
  0x14   :  { %984 = vset.pattern.permute.xlu1 %v1074_v0  ;;  %983 = vset.pattern.permute.xlu0 %v1074_v0  ;;  %v39_v4 = vld [vmem:[%s1368_s0 + $0x18] sm:$0xff]  ;;  %v37_v5 = vld [vmem:[%s1368_s0 + $0x8] sm:$0xff]  ;;  %v985_v6 = vld [vmem:[%s1369_s1] sm:$0xff]   ;;  %vm114_vm4 = vcmask 261120   ;;  %vm1076_vm9 = vmmov 0   ;;  %s1077_s15 = smov [#allocation5]  }
  0x15   :  { %816 = vmatprep.subr.bf16.mxu1 %v1075_v1  ;;  %53 = vperm.xlu1 %984, %v38_v2   ;;  %v41_v7 = vld [vmem:[%s1368_s0 + $0x28] sm:$0xff]  ;;  %v40_v8 = vld [vmem:[%s1368_s0 + $0x20] sm:$0xff]  ;;  %v43_v10 = vld [vmem:[%s1368_s0 + $0x38] sm:$0xff]  ;;  %v45_v17 = vand.u32 127, %v44_v16  ;;  %s686_s16 = sshll.u32 %s1077_s15, 4  ;;  %s687_s16 = int_to_ptr.vmem [resolvable:$true] %s686_s16 }
  0x16   :  { %47 = vperm.xlu0 %983, %v36_v3   ;;  %v986_v9 = vld [vmem:[%s1369_s1 + $0x8] sm:$0xff]   ;;  %804 = vmatprep.subr.bf16.mxu0 %v985_v6  ;;  %v42_v11 = vld [vmem:[%s1368_s0 + $0x30] sm:$0xff]  ;;  %v1155_v12 = vld [vmem:[%s1370_s2] sm:$0xff]   ;;  %p1050_p9 = scmp.lt.s32.totalorder %s687_s16, %s687_s16 }
  0x17   :  { %805 = vmatpush3.bf16.msra.mxu0 %v985_v6  ;;  %817 = vmatpush3.bf16.msra.mxu1 %v1155_v12  ;;  %v1161_v13 = vld [vmem:[%s1370_s2 + $0x8] sm:$0xff]   ;;  %v1168_v14 = vld [vmem:[%s1370_s2 + $0x10] sm:$0xff]   ;;  %v1175_v15 = vld [vmem:[%s1370_s2 + $0x18] sm:$0xff]  }
  0x18   :  { %806 = vmatprep.subr.bf16.mxu0 %v986_v9  ;;  %818 = vmatprep.subr.bf16.mxu1 %v1075_v1  ;;  %v1203_v38 = vld [vmem:[%s1370_s2 + $0x20] sm:$0xff]   ;;  %v1212_v39 = vld [vmem:[%s1370_s2 + $0x28] sm:$0xff]   ;;  %v1221_v40 = vld [vmem:[%s1370_s2 + $0x30] sm:$0xff]  }
  0x19   :  { %56 = vperm.xlu1 %984, %v39_v4   ;;  %v1230_v41 = vld [vmem:[%s1370_s2 + $0x38] sm:$0xff]   ;;  %832 = vmatprep.mubr.msk.bf16.mxu1 %vm1076_vm9, %v1075_v1 }
  0x1a   :  { %50 = vperm.xlu0 %983, %v37_v5  }
  0x1b   :  { %807 = vmatpush3.bf16.msra.mxu0 %v986_v9  ;;  %819 = vmatpush3.bf16.msra.mxu1 %v1161_v13 }
  0x1c   :  { %836 = vmatprep.subr.bf16.mxu0 %v1075_v1  ;;  %820 = vmatprep.subr.bf16.mxu1 %v1075_v1 }
  0x1d   :  { %62 = vperm.xlu1 %984, %v41_v7  }
  0x1e   :  { %59 = vperm.xlu0 %983, %v40_v8  }
  0x1f   :  { %821 = vmatpush3.bf16.msra.mxu1 %v1168_v14 }
  0x20   :  { %822 = vmatprep.subr.bf16.mxu1 %v1075_v1 }
  0x21   :  { %68 = vperm.xlu1 %984, %v43_v10  }
  0x22   :  { %65 = vperm.xlu0 %983, %v42_v11  }
  0x23   :  { %823 = vmatpush3.bf16.msra.mxu1 %v1175_v15 }
  0x24   :  { %824 = vmatprep.subr.bf16.mxu1 %v1075_v1 }
  0x27   :  { %825 = vmatpush3.bf16.msra.mxu1 %v1203_v38 }
  0x28   :  { %826 = vmatprep.subr.bf16.mxu1 %v1075_v1 }
  0x2b   :  { %827 = vmatpush3.bf16.msra.mxu1 %v1212_v39 }
  0x2c   :  { %828 = vmatprep.subr.bf16.mxu1 %v1075_v1 }
  0x2f   :  { %829 = vmatpush3.bf16.msra.mxu1 %v1221_v40 }
  0x30   :  { %830 = vmatprep.subr.bf16.mxu1 %v1075_v1 }
  0x33   :  { %831 = vmatpush3.bf16.msra.mxu1 %v1230_v41 }
  0x34   :  { %856 = vmatprep.subr.bf16.mxu1 %v1075_v1 }
  0x94   :  { %v54_v18 = vpop.permute.xlu1 %53 }
  0x95   :  { %v48_v19 = vpop.permute.xlu0 %47  ;;  %vm72_vm0 = vcmp.eq.s32.totalorder %v45_v17, %v54_v18 }
  0x96   :  { %vm70_vm1 = vcmp.eq.s32.totalorder %v45_v17, %v48_v19  ;;  %v697_v22 = vsel %vm72_vm0, 1.0, %v1075_v1 }
  0x97   :  { %v695_v23 = vsel %vm70_vm1, 1.0, %v1075_v1 }
  0x98   :  { %v57_v20 = vpop.permute.xlu1 %56 }
  0x99   :  { %v51_v21 = vpop.permute.xlu0 %50  ;;  %vm73_vm2 = vcmp.eq.s32.totalorder %v45_v17, %v57_v20 }
  0x9a   :  { %vm71_vm3 = vcmp.eq.s32.totalorder %v45_v17, %v51_v21  ;;  %v698_v24 = vsel %vm73_vm2, 1.0, %v1075_v1 }
  0x9b   :  { %v696_v25 = vsel %vm71_vm3, 1.0, %v1075_v1  ;;  %v95_v26 = vpack.c.bf16 %v698_v24, %v697_v22  ;;  %v995_v24 = vld [vmem:[#allocation2] sm:$0xff]  }
  0x9c   :  { %v94_v27 = vpack.c.bf16 %v696_v25, %v695_v23  ;;  %v63_v28 = vpop.permute.xlu1 %62  ;;  %v996_v25 = vld [vmem:[#allocation2 + $0x8] sm:$0xff]  }
  0x9d   :  { %v60_v29 = vpop.permute.xlu0 %59  ;;  %vm75_vm5 = vcmp.eq.s32.totalorder %v45_v17, %v63_v28 }
  0x9e   :  { %vm74_vm6 = vcmp.eq.s32.totalorder %v45_v17, %v60_v29  ;;  %808 = vmatprep.mubr.msk.bf16.mxu0 %vm114_vm4, %v94_v27  ;;  %v700_v30 = vsel %vm75_vm5, 1.0, %v1075_v1  ;;  %v998_v27 = vld [vmem:[#allocation2 + $0x18] sm:$0xff]  }
  0x9f   :  { %v699_v31 = vsel %vm74_vm6, 1.0, %v1075_v1  ;;  %809 = vmatmul.mubr.msk.bf16.vlgmr.msra.gmra.mrb[0].mxu0 %vm114_vm4, %v95_v26  ;;  %v997_v26 = vld [vmem:[#allocation2 + $0x10] sm:$0xff]  }
  0xa0   :  { %v96_v32 = vpack.c.bf16 %v700_v30, %v699_v31  ;;  %837 = vmatpush3.bf16.msra.mxu0 %v1155_v12  ;;  %v69_v33 = vpop.permute.xlu1 %68 }
  0xa1   :  { %v66_v34 = vpop.permute.xlu0 %65  ;;  %838 = vmatprep.subr.bf16.mxu0 %v1075_v1  ;;  %vm77_vm7 = vcmp.eq.s32.totalorder %v45_v17, %v69_v33 }
  0xa2   :  { %vm76_vm8 = vcmp.eq.s32.totalorder %v45_v17, %v66_v34  ;;  %812 = vmatprep.mubr.msk.bf16.mxu0 %vm114_vm4, %v96_v32  ;;  %v702_v35 = vsel %vm77_vm7, 1.0, %v1075_v1 }
  0xa3   :  { %v701_v36 = vsel %vm76_vm8, 1.0, %v1075_v1 }
  0xa4   :  { %v97_v37 = vpack.c.bf16 %v702_v35, %v701_v36  ;;  %839 = vmatpush3.bf16.msra.mxu0 %v1161_v13  ;;  %v999_v35 = vld [vmem:[#allocation2 + $0x20] sm:$0xff]   ;;  %v1000_v36 = vld [vmem:[#allocation2 + $0x28] sm:$0xff]  }
  0xa5   :  { %840 = vmatprep.subr.bf16.mxu0 %v1075_v1 }
  0xa7   :  { %813 = vmatmul.mubr.msk.bf16.gmra.mrb[4].mxu0 %vm114_vm4, %v97_v37  ;;  %v1001_v37 = vld [vmem:[#allocation2 + $0x30] sm:$0xff]  }
  0xa8   :  { %841 = vmatpush3.bf16.msra.mxu0 %v1168_v14  ;;  %852 = vmatprep.mubr.msk.bf16.mxu0 %vm1076_vm9, %v1075_v1 }
  0xa9   :  { %842 = vmatprep.subr.bf16.mxu0 %v1075_v1 }
  0xac   :  { %843 = vmatpush3.bf16.msra.mxu0 %v1175_v15 }
  0xad   :  { %844 = vmatprep.subr.bf16.mxu0 %v1075_v1 }
  0xb0   :  { %845 = vmatpush3.bf16.msra.mxu0 %v1203_v38 }
  0xb1   :  { %846 = vmatprep.subr.bf16.mxu0 %v1075_v1 }
  0xb4   :  { %847 = vmatpush3.bf16.msra.mxu0 %v1212_v39 }
  0xb5   :  { %848 = vmatprep.subr.bf16.mxu0 %v1075_v1 }
  0xb8   :  { %849 = vmatpush3.bf16.msra.mxu0 %v1221_v40 }
  0xb9   :  { %850 = vmatprep.subr.bf16.mxu0 %v1075_v1 }
  0xbc   :  { %851 = vmatpush3.bf16.msra.mxu0 %v1230_v41 }
  0xbd   :  { %876 = vmatprep.subr.bf16.mxu0 %v1075_v1 }
 0x172   :  { %v810_v42 = vpop.f32.mrb[0].mxu0 }
 0x173   :  { %v161_v43 = vpop.f32.mrb[1].mxu0 }
 0x174   :  { %1003 = vtanh.f32 %v161_v43  ;;  %v1240_v44 = vpop.f32.mrb[2].mxu0 }
 0x175   :  { %v164_v45 = vpop.f32.mrb[3].mxu0 }
 0x17a   :  { %v1242_v46 = vpop.f32.mrb[4].mxu0 }
 0x17b   :  { %v1244_v47 = vpop.f32.mrb[5].mxu0 }
 0x17c   :  { %v1246_v48 = vpop.f32.mrb[6].mxu0 }
 0x17d   :  { %v1248_v49 = vpop.f32.mrb[7].mxu0 }
 0x17e   :  { %v1004_v50 = vpop.eup %1003 }
 0x17f   :  { %v209_v51 = vpack.c.bf16 %v1004_v50, %v1004_v50 }
 0x181   :  { %833 = vmatmul.mubr.bf16.vlgmr.msra.gmra.mrb[0].mxu1 %v209_v51 }
 0x182   :  { %857 = vmatpush3.bf16.msra.mxu1 %v1155_v12  ;;  %872 = vmatprep.mubr.msk.bf16.mxu1 %vm1076_vm9, %v1075_v1 }
 0x183   :  { %858 = vmatprep.subr.bf16.mxu1 %v1075_v1 }
 0x186   :  { %859 = vmatpush3.bf16.msra.mxu1 %v1161_v13 }
 0x187   :  { %860 = vmatprep.subr.bf16.mxu1 %v1075_v1 }
 0x18a   :  { %861 = vmatpush3.bf16.msra.mxu1 %v1168_v14 }
 0x18b   :  { %862 = vmatprep.subr.bf16.mxu1 %v1075_v1 }
 0x18e   :  { %863 = vmatpush3.bf16.msra.mxu1 %v1175_v15 }
 0x18f   :  { %864 = vmatprep.subr.bf16.mxu1 %v1075_v1 }
 0x192   :  { %865 = vmatpush3.bf16.msra.mxu1 %v1203_v38 }
 0x193   :  { %866 = vmatprep.subr.bf16.mxu1 %v1075_v1 }
 0x196   :  { %867 = vmatpush3.bf16.msra.mxu1 %v1212_v39 }
 0x197   :  { %868 = vmatprep.subr.bf16.mxu1 %v1075_v1 }
 0x19a   :  { %869 = vmatpush3.bf16.msra.mxu1 %v1221_v40 }
 0x19b   :  { %870 = vmatprep.subr.bf16.mxu1 %v1075_v1 }
 0x19e   :  { %871 = vmatpush3.bf16.msra.mxu1 %v1230_v41 }
 0x19f   :  { %896 = vmatprep.subr.bf16.mxu1 %v1075_v1 }
 0x254   :  { %v292_v52 = vpop.f32.mrb[0].mxu1 }
 0x255   :  { %v298_v53 = vadd.f32 %v292_v52, %v164_v45  ;;  %v834_v54 = vpop.f32.mrb[1].mxu1 }
 0x256   :  { %v295_v55 = vpop.f32.mrb[2].mxu1 }
 0x257   :  { %1005 = vtanh.f32 %v298_v53  ;;  %v835_v56 = vpop.f32.mrb[3].mxu1 }
 0x261   :  { %v1006_v57 = vpop.eup %1005 }
 0x262   :  { %v300_v58 = vpack.c.bf16 %v1006_v57, %v1006_v57 }
 0x264   :  { %853 = vmatmul.mubr.bf16.vlgmr.msra.gmra.mrb[8].mxu0 %v300_v58 }
 0x265   :  { %877 = vmatpush3.bf16.msra.mxu0 %v1155_v12  ;;  %892 = vmatprep.mubr.msk.bf16.mxu0 %vm1076_vm9, %v1075_v1 }
 0x266   :  { %878 = vmatprep.subr.bf16.mxu0 %v1075_v1 }
 0x269   :  { %879 = vmatpush3.bf16.msra.mxu0 %v1161_v13 }
 0x26a   :  { %880 = vmatprep.subr.bf16.mxu0 %v1075_v1 }
 0x26d   :  { %881 = vmatpush3.bf16.msra.mxu0 %v1168_v14 }
 0x26e   :  { %882 = vmatprep.subr.bf16.mxu0 %v1075_v1 }
 0x271   :  { %883 = vmatpush3.bf16.msra.mxu0 %v1175_v15 }
 0x272   :  { %884 = vmatprep.subr.bf16.mxu0 %v1075_v1 }
 0x275   :  { %885 = vmatpush3.bf16.msra.mxu0 %v1203_v38 }
 0x276   :  { %886 = vmatprep.subr.bf16.mxu0 %v1075_v1 }
 0x279   :  { %887 = vmatpush3.bf16.msra.mxu0 %v1212_v39 }
 0x27a   :  { %888 = vmatprep.subr.bf16.mxu0 %v1075_v1 }
 0x27d   :  { %889 = vmatpush3.bf16.msra.mxu0 %v1221_v40 }
 0x27e   :  { %890 = vmatprep.subr.bf16.mxu0 %v1075_v1 }
 0x281   :  { %891 = vmatpush3.bf16.msra.mxu0 %v1230_v41 }
 0x282   :  { %916 = vmatprep.subr.bf16.mxu0 %v1075_v1 }
 0x337   :  { %v335_v59 = vpop.f32.mrb[8].mxu0 }
 0x338   :  { %v341_v60 = vadd.f32 %v810_v42, %v335_v59  ;;  %v854_v61 = vpop.f32.mrb[9].mxu0 }
 0x339   :  { %v338_v62 = vpop.f32.mrb[10].mxu0 }
 0x33a   :  { %1007 = vtanh.f32 %v341_v60  ;;  %v855_v63 = vpop.f32.mrb[11].mxu0 }
 0x344   :  { %v1008_v0 = vpop.eup %1007 }
 0x345   :  { %v343_v2 = vpack.c.bf16 %v1008_v0, %v1008_v0 }
 0x347   :  { %873 = vmatmul.mubr.bf16.vlgmr.msra.gmra.mrb[4].mxu1 %v343_v2 }
 0x348   :  { %897 = vmatpush3.bf16.msra.mxu1 %v1155_v12  ;;  %912 = vmatprep.mubr.msk.bf16.mxu1 %vm1076_vm9, %v1075_v1 }
 0x349   :  { %898 = vmatprep.subr.bf16.mxu1 %v1075_v1 }
 0x34c   :  { %899 = vmatpush3.bf16.msra.mxu1 %v1161_v13 }
 0x34d   :  { %900 = vmatprep.subr.bf16.mxu1 %v1075_v1 }
 0x350   :  { %901 = vmatpush3.bf16.msra.mxu1 %v1168_v14 }
 0x351   :  { %902 = vmatprep.subr.bf16.mxu1 %v1075_v1 }
 0x354   :  { %903 = vmatpush3.bf16.msra.mxu1 %v1175_v15 }
 0x355   :  { %904 = vmatprep.subr.bf16.mxu1 %v1075_v1 }
 0x358   :  { %905 = vmatpush3.bf16.msra.mxu1 %v1203_v38 }
 0x359   :  { %906 = vmatprep.subr.bf16.mxu1 %v1075_v1 }
 0x35c   :  { %907 = vmatpush3.bf16.msra.mxu1 %v1212_v39 }
 0x35d   :  { %908 = vmatprep.subr.bf16.mxu1 %v1075_v1 }
 0x360   :  { %909 = vmatpush3.bf16.msra.mxu1 %v1221_v40 }
 0x361   :  { %910 = vmatprep.subr.bf16.mxu1 %v1075_v1 }
 0x364   :  { %911 = vmatpush3.bf16.msra.mxu1 %v1230_v41 }
 0x365   :  { %936 = vmatprep.subr.bf16.mxu1 %v1075_v1 }
 0x41a   :  { %v378_v3 = vpop.f32.mrb[4].mxu1 }
 0x41b   :  { %v384_v4 = vadd.f32 %v1240_v44, %v378_v3  ;;  %v874_v5 = vpop.f32.mrb[5].mxu1 }
 0x41c   :  { %v381_v6 = vpop.f32.mrb[6].mxu1 }
 0x41d   :  { %1009 = vtanh.f32 %v384_v4  ;;  %v875_v7 = vpop.f32.mrb[7].mxu1 }
 0x427   :  { %v1010_v8 = vpop.eup %1009 }
 0x428   :  { %v386_v9 = vpack.c.bf16 %v1010_v8, %v1010_v8 }
 0x42a   :  { %893 = vmatmul.mubr.bf16.vlgmr.msra.gmra.mrb[12].mxu0 %v386_v9 }
 0x42b   :  { %917 = vmatpush3.bf16.msra.mxu0 %v1155_v12  ;;  %932 = vmatprep.mubr.msk.bf16.mxu0 %vm1076_vm9, %v1075_v1 }
 0x42c   :  { %918 = vmatprep.subr.bf16.mxu0 %v1075_v1 }
 0x42f   :  { %919 = vmatpush3.bf16.msra.mxu0 %v1161_v13 }
 0x430   :  { %920 = vmatprep.subr.bf16.mxu0 %v1075_v1 }
 0x433   :  { %921 = vmatpush3.bf16.msra.mxu0 %v1168_v14 }
 0x434   :  { %922 = vmatprep.subr.bf16.mxu0 %v1075_v1 }
 0x437   :  { %923 = vmatpush3.bf16.msra.mxu0 %v1175_v15 }
 0x438   :  { %924 = vmatprep.subr.bf16.mxu0 %v1075_v1 }
 0x43b   :  { %925 = vmatpush3.bf16.msra.mxu0 %v1203_v38 }
 0x43c   :  { %926 = vmatprep.subr.bf16.mxu0 %v1075_v1 }
 0x43f   :  { %927 = vmatpush3.bf16.msra.mxu0 %v1212_v39 }
 0x440   :  { %928 = vmatprep.subr.bf16.mxu0 %v1075_v1 }
 0x443   :  { %929 = vmatpush3.bf16.msra.mxu0 %v1221_v40 }
 0x444   :  { %930 = vmatprep.subr.bf16.mxu0 %v1075_v1 }
 0x447   :  { %931 = vmatpush3.bf16.msra.mxu0 %v1230_v41 }
 0x448   :  { %956 = vmatprep.subr.bf16.mxu0 %v1075_v1 }
 0x4fd   :  { %v421_v10 = vpop.f32.mrb[12].mxu0 }
 0x4fe   :  { %v427_v11 = vadd.f32 %v421_v10, %v1244_v47  ;;  %v894_v16 = vpop.f32.mrb[13].mxu0 }
 0x4ff   :  { %v424_v17 = vpop.f32.mrb[14].mxu0 }
 0x500   :  { %1011 = vtanh.f32 %v427_v11  ;;  %v895_v18 = vpop.f32.mrb[15].mxu0 }
 0x50a   :  { %v1012_v19 = vpop.eup %1011 }
 0x50b   :  { %v429_v20 = vpack.c.bf16 %v1012_v19, %v1012_v19 }
 0x50d   :  { %913 = vmatmul.mubr.bf16.vlgmr.msra.gmra.mrb[8].mxu1 %v429_v20 }
 0x50e   :  { %937 = vmatpush3.bf16.msra.mxu1 %v1155_v12  ;;  %952 = vmatprep.mubr.msk.bf16.mxu1 %vm1076_vm9, %v1075_v1 }
 0x50f   :  { %938 = vmatprep.subr.bf16.mxu1 %v1075_v1 }
 0x512   :  { %939 = vmatpush3.bf16.msra.mxu1 %v1161_v13 }
 0x513   :  { %940 = vmatprep.subr.bf16.mxu1 %v1075_v1 }
 0x516   :  { %941 = vmatpush3.bf16.msra.mxu1 %v1168_v14 }
 0x517   :  { %942 = vmatprep.subr.bf16.mxu1 %v1075_v1 }
 0x51a   :  { %943 = vmatpush3.bf16.msra.mxu1 %v1175_v15 }
 0x51b   :  { %944 = vmatprep.subr.bf16.mxu1 %v1075_v1 }
 0x51e   :  { %945 = vmatpush3.bf16.msra.mxu1 %v1203_v38  ;;  %v1002_v38 = vld [vmem:[#allocation2 + $0x38] sm:$0xff]  }
 0x51f   :  { %946 = vmatprep.subr.bf16.mxu1 %v1075_v1 }
 0x522   :  { %947 = vmatpush3.bf16.msra.mxu1 %v1212_v39 }
 0x523   :  { %948 = vmatprep.subr.bf16.mxu1 %v1075_v1 }
 0x526   :  { %949 = vmatpush3.bf16.msra.mxu1 %v1221_v40 }
 0x527   :  { %950 = vmatprep.subr.bf16.mxu1 %v1075_v1 }
 0x52a   :  { %951 = vmatpush3.bf16.msra.mxu1 %v1230_v41 }
 0x5e0   :  { %v464_v12 = vpop.f32.mrb[8].mxu1 }
 0x5e1   :  { %v470_v13 = vadd.f32 %v464_v12, %v1248_v49  ;;  %v914_v14 = vpop.f32.mrb[9].mxu1 }
 0x5e2   :  { %v467_v15 = vpop.f32.mrb[10].mxu1 }
 0x5e3   :  { %1013 = vtanh.f32 %v470_v13  ;;  %v915_v21 = vpop.f32.mrb[11].mxu1 }
 0x5ed   :  { %v1014_v22 = vpop.eup %1013 }
 0x5ee   :  { %v472_v23 = vpack.c.bf16 %v1014_v22, %v1014_v22 }
 0x5f0   :  { %933 = vmatmul.mubr.bf16.vlgmr.msra.gmra.mrb[16].mxu0 %v472_v23 }
 0x5f1   :  { %972 = vmatprep.mubr.msk.bf16.mxu0 %vm1076_vm9, %v1075_v1  ;;  %957 = vmatpush3.bf16.msra.mxu0 %v995_v24 }
 0x5f2   :  { %958 = vmatprep.subr.bf16.mxu0 %v1075_v1 }
 0x5f5   :  { %959 = vmatpush3.bf16.msra.mxu0 %v996_v25 }
 0x5f6   :  { %960 = vmatprep.subr.bf16.mxu0 %v1075_v1 }
 0x5f9   :  { %961 = vmatpush3.bf16.msra.mxu0 %v997_v26 }
 0x5fa   :  { %962 = vmatprep.subr.bf16.mxu0 %v1075_v1 }
 0x5fd   :  { %963 = vmatpush3.bf16.msra.mxu0 %v998_v27 }
 0x5fe   :  { %964 = vmatprep.subr.bf16.mxu0 %v1075_v1 }
 0x601   :  { %965 = vmatpush3.bf16.msra.mxu0 %v999_v35 }
 0x602   :  { %966 = vmatprep.subr.bf16.mxu0 %v1075_v1 }
 0x605   :  { %967 = vmatpush3.bf16.msra.mxu0 %v1000_v36 }
 0x606   :  { %968 = vmatprep.subr.bf16.mxu0 %v1075_v1 }
 0x609   :  { %969 = vmatpush3.bf16.msra.mxu0 %v1001_v37 }
 0x60a   :  { %970 = vmatprep.subr.bf16.mxu0 %v1075_v1 }
 0x60d   :  { %971 = vmatpush3.bf16.msra.mxu0 %v1002_v38 }
 0x6c3   :  { %v507_v28 = vpop.f32.mrb[16].mxu0 }
 0x6c4   :  { %v513_v29 = vadd.f32 %v1242_v46, %v507_v28  ;;  %v934_v30 = vpop.f32.mrb[17].mxu0  ;;  %v717_v46 = vld [vmem:[%s1372_s4] ss:$0 sm:$0xff]  ;;  %s1045_s4 = scalar_lea.vmem %s687_s16, 128 }
 0x6c5   :  { %v510_v31 = vpop.f32.mrb[18].mxu0  ;;  %p1046_p8 = scmp.ne.s32.totalorder %s687_s16, %s1045_s4  ;;  %p1051_p10 = scmp.lt.s32.totalorder %s1045_s4, %s1045_s4 }
 0x6c6   :  { %1015 = vtanh.f32 %v513_v29  ;;  %v935_v32 = vpop.f32.mrb[19].mxu0 }
 0x6c7   :  { %p1052_p11 = por %p1051_p10, %p1050_p9 }
 0x6c9   :  { %p1053_p12 = pnand %p1052_p11, %p1046_p8 }
 0x6d0   :  { %v1016_v33 = vpop.eup %1015 }
 0x6d1   :  { %v515_v34 = vpack.c.bf16 %v1016_v33, %v1016_v33 }
 0x6d3   :  { %953 = vmatmul.mubr.bf16.vlgmr.msra.gmra.mrb[12].mxu1 %v515_v34 }
 0x7a6   :  { %v550_v39 = vpop.f32.mrb[12].mxu1 }
 0x7a7   :  { %v556_v40 = vadd.f32 %v1246_v48, %v550_v39  ;;  %v954_v41 = vpop.f32.mrb[13].mxu1 }
 0x7a8   :  { %v553_v42 = vpop.f32.mrb[14].mxu1 }
 0x7a9   :  { %1017 = vtanh.f32 %v556_v40  ;;  %v955_v43 = vpop.f32.mrb[15].mxu1 }
 0x7b3   :  { %v1018_v44 = vpop.eup %1017 }
 0x7b4   :  { %v558_v45 = vpack.c.bf16 %v1018_v44, %v1018_v44 }
 0x7b6   :  { %973 = vmatmul.mubr.bf16.vlgmr.msra.gmra.mrb[20].mxu0 %v558_v45 }
 0x889   :  { %v664_v47 = vpop.f32.mrb[20].mxu0 }
 0x88a   :  { %v665_v49 = vadd.f32 %v717_v46, %v664_v47  ;;  %v974_v50 = vpop.f32.mrb[21].mxu0 }
 0x88b   :  { %v667_v1 = vpop.f32.mrb[22].mxu0 }
 0x88c   :  { %670 = vmax.xlane.f32.xlu0 %v665_v49  ;;  %v975_v51 = vpop.f32.mrb[23].mxu0 }
 0x919   :  { %v671_v52 = vpop.xlane.xlu0 %670 }
 0x91a   :  { %v672_v53 = vsub.f32 %v665_v49, %v671_v52 }
 0x91c   :  { %v673_v48 = vmul.f32 1.442695, %v672_v53 }
 0x91e   :  { %1019 = vpow2.f32 %v673_v48 }
 0x928   :  { %v1020_v54 = vpop.eup %1019 }
 0x929   :  { %675 = vadd.xlane.f32.xlu1 %v1020_v54 }
 0x9b6   :  { %v676_v55 = vpop.xlane.xlu1 %675 }
 0x9b7   :  { %1021 = vrcp.f32 %v676_v55 }
 0x9c1   :  { %v1022_v56 = vpop.eup %1021 }
 0x9c2   :  { %v678_v57 = vmul.f32 %v1022_v56, %v1020_v54 }
 0x9c4   :  { %679 = vst [vmem:[#allocation5] sm:$0xff] %v678_v57 }
 0x9c5   :  { %1056 = shalt.err (!%p1053_p12)
}
 0x9c6   :  { %s1057_s19 = scalar_lea.hbm %s1373_s5, 128 }
 0x9c7   :  { %p1058_p13 = scmp.ne.s32.totalorder %s1373_s5, %s1057_s19  ;;  %p1061_p0 = scmp.lt.u32.totalorder %s1057_s19, %s1373_s5 }
 0x9c9   :  { %p1063_p1 = pnand %p1061_p0, %p1058_p13 }
 0x9cb   :  { %1066 = shalt.err (!%p1063_p1)
}
 0x9cc   :  { %689 = dma.vmem_to_hbm [thread:$0]  %s687_s16, 128, %s1373_s5, [#allocation4]  }
 0x9cd   :  { %1069 = dma.done.wait [#allocation4], 128  }
 0x9ce   :  { %1070 = vsyncadd [#allocation4], 4294967168 }
 0x9cf   :  { %693 = vsyncpa [#allocation3], 1 }
 0x9d0   :  { %694 = vsyncpa [#allocation4], 1 }

</bundles_post_ra>
